<compile_context>
chip_gen: v7x
topology: tpu7x:2x2x1
jax: 0.10.0
libtpu: 0.0.40
codegen_flags: <defaults>
</compile_context>

<pallas_src>
import functools

import jax
import jax.numpy as jnp
from jax import lax
from jax.experimental import pallas as pl
from jax.experimental.pallas import tpu as pltpu


# ---------------------------------------------------------------------------
# Pass 1: 1x1-conv projections (value, key, query^T) over the whole sequence.
# ---------------------------------------------------------------------------
def _projection_kernel(x_ref, wv_ref, bv_ref, wk_ref, bk_ref, wqt_ref, bq_ref,
                       v_out_ref, k_out_ref, qt_out_ref):
    xb = x_ref[0].astype(jnp.bfloat16)                                   # (C, TI)

    v = jnp.dot(wv_ref[...], xb,
                preferred_element_type=jnp.float32) + bv_ref[...]        # (C,  TI)
    k = jnp.dot(wk_ref[...], xb,
                preferred_element_type=jnp.float32) + bk_ref[...]        # (Cq, TI)
    # Pre-transposed query: qt[t, cq] = sum_c x[c, t] * wq[cq, c] + bq[cq]
    qt = lax.dot_general(xb, wqt_ref[...], (((0,), (0,)), ((), ())),
                         preferred_element_type=jnp.float32) + bq_ref[...]  # (TI, Cq)

    v_out_ref[0] = v.astype(jnp.bfloat16)
    k_out_ref[0] = k.astype(jnp.bfloat16)
    qt_out_ref[0] = qt.astype(jnp.bfloat16)


# ---------------------------------------------------------------------------
# Pass 2: attention over one column tile.
# ---------------------------------------------------------------------------
def _attention_kernel(x_ref, v_ref, qt_ref, k_ref, *rest, padded, exp_dtype):
    if padded:
        bias_ref, gamma_ref, o_ref = rest
    else:
        gamma_ref, o_ref = rest

    # qk[i, j] = sum_c q[i, c] * k[c, j]    (torch: bmm(query^T, key))
    # Contraction dim (Cq) is last on the LHS -> plain MXU matmul, no relayout.
    qk = jnp.dot(qt_ref[0], k_ref[0],
                 preferred_element_type=jnp.float32)                     # (N_pad, TJ)
    if padded:
        qk = qk + bias_ref[...]          # additive mask: 0 real rows, -1e30 pad rows

    # torch F.softmax(query_key, dim=1) == softmax over axis 0 here.  Keep the
    # exponentials unnormalized; fold the normalization into a (1, TJ) column
    # scale after the value matmul (denominator + reciprocal stay in f32).
    m = jnp.max(qk, axis=0, keepdims=True)                               # (1, TJ)
    e = jnp.exp((qk - m).astype(exp_dtype))                              # bf16 on v6e/v7x
    denom = jnp.sum(e.astype(jnp.float32), axis=0, keepdims=True)        # (1, TJ) f32
    inv_denom = pl.reciprocal(denom, approx=True)

    # out[c, j] = sum_i v[c, i] * attn[i, j]  (torch: bmm(value, attention))
    out = jnp.dot(v_ref[0], e.astype(jnp.bfloat16),
                  preferred_element_type=jnp.float32) * inv_denom        # (C, TJ)

    gamma = gamma_ref[0, 0]
    o_ref[0] = (gamma * out + x_ref[0]).astype(o_ref.dtype)


# ---------------------------------------------------------------------------
# Sizing helpers.
# ---------------------------------------------------------------------------
def _tpu_kind():
    try:
        return jax.devices()[0].device_kind.lower()
    except Exception:
        return ""


def _vmem_capacity_bytes(kind):
    try:
        return int(pltpu.get_tpu_info().vmem_capacity_bytes)
    except Exception:
        if ("v7" in kind) or ("7x" in kind):
            return 64 * 1024 * 1024
        return 128 * 1024 * 1024


def _attn_vmem_estimate(C, Cq, n_pad, tj, *, e_bytes):
    f32, bf16 = 4, 2
    c8 = -(-C // 8) * 8
    c16 = -(-C // 16) * 16
    cq16 = -(-Cq // 16) * 16
    cq_lane = -(-Cq // 128) * 128
    est = (2 * c8 * tj * f32              # x residual tile (double-buffered)
           + 2 * c16 * n_pad * bf16       # V (double-buffered, per batch)
           + 2 * n_pad * cq_lane * bf16   # Q^T (double-buffered, lane-padded)
           + 2 * cq16 * tj * bf16         # K tile (double-buffered)
           + 2 * c8 * tj * f32            # out tile (double-buffered)
           + n_pad * tj * f32             # qk
           + n_pad * tj * e_bytes         # e
           + n_pad * tj * f32             # f32 view of e for the denominator
           + 2 * n_pad * 128 * f32)       # additive mask column (lane-padded)
    return int(est)


def _pick_tile(n_pad, budget, est_fn):
    for t in (512, 256, 128):
        if n_pad % t == 0 and est_fn(t) <= budget:
            return t
    return 128


# ---------------------------------------------------------------------------
# Wrapper: NCHW -> flatten + pad N to a lane-dense multiple of 128 -> 2 passes.
# ---------------------------------------------------------------------------
def self_attention(x, wq, bq, wk, bk, wv, bv, gamma):
    """x: (B, C, H, W) f32.  wq/wk: (Cq, C), wv: (C, C), biases 1-D, gamma scalar."""
    B, C, H, W = x.shape
    N = H * W
    Cq = wq.shape[0]

    kind = _tpu_kind()
    vmem_cap = _vmem_capacity_bytes(kind)
    budget = int(vmem_cap * 0.78)      # headroom: ~50 MiB on v7x, ~100 MiB on v5e/v6e
    use_bf16_exp = ("v6" in kind) or ("v7" in kind) or ("7x" in kind)
    exp_dtype = jnp.bfloat16 if use_bf16_exp else jnp.float32
    e_bytes = 2 if use_bf16_exp else 4

    # Lane-dense sequence length.
    N_pad = max(128, ((N + 127) // 128) * 128)
    padded = N_pad != N

    est_fn = functools.partial(_attn_vmem_estimate, C, Cq, N_pad, e_bytes=e_bytes)
    TJ = _pick_tile(N_pad, budget, est_fn)
    NJ = N_pad // TJ
    TI = next(t for t in (512, 256, 128) if N_pad % t == 0)
    NI = N_pad // TI

    xf = x.reshape(B, C, N).astype(jnp.float32)
    if padded:
        xf = jnp.pad(xf, ((0, 0), (0, 0), (0, N_pad - N)))

    # Weights as bf16 MXU operands; f32 biases added after the f32-accumulated
    # matmuls.  Query weight is pre-transposed so Q comes out as (N_pad, Cq).
    wv_b = wv.astype(jnp.bfloat16)                       # (C,  C)
    wk_b = wk.astype(jnp.bfloat16)                       # (Cq, C)
    wqt_b = wq.T.astype(jnp.bfloat16)                    # (C,  Cq)
    bv_c = bv.astype(jnp.float32).reshape(C, 1)
    bk_c = bk.astype(jnp.float32).reshape(Cq, 1)
    bq_r = bq.astype(jnp.float32).reshape(1, Cq)
    gamma_2 = jnp.asarray(gamma, dtype=jnp.float32).reshape(1, 1)

    # ---- Pass 1: projections (one shot over the whole sequence). -----------
    proj_est = int(2 * C * TI * 4
                   + 4 * (C * C + 2 * Cq * C) * 2
                   + 2 * (C + Cq) * TI * 2 + 2 * TI * 128 * 2
                   + (C + Cq) * TI * 4 + TI * 128 * 4
                   + C * TI * 2)
    proj_vmem = int(min(budget, max(32 * 1024 * 1024, proj_est * 2)))

    v_b, k_b, qt_b = pl.pallas_call(
        _projection_kernel,
        out_shape=(
            jax.ShapeDtypeStruct((B, C, N_pad), jnp.bfloat16),
            jax.ShapeDtypeStruct((B, Cq, N_pad), jnp.bfloat16),
            jax.ShapeDtypeStruct((B, N_pad, Cq), jnp.bfloat16),
        ),
        grid_spec=pltpu.PrefetchScalarGridSpec(
            num_scalar_prefetch=0,
            grid=(B, NI),
            in_specs=[
                pl.BlockSpec((1, C, TI), lambda b, i: (b, 0, i)),   # x
                pl.BlockSpec((C, C), lambda b, i: (0, 0)),          # W_v
                pl.BlockSpec((C, 1), lambda b, i: (0, 0)),          # b_v
                pl.BlockSpec((Cq, C), lambda b, i: (0, 0)),         # W_k
                pl.BlockSpec((Cq, 1), lambda b, i: (0, 0)),         # b_k
                pl.BlockSpec((C, Cq), lambda b, i: (0, 0)),         # W_q^T
                pl.BlockSpec((1, Cq), lambda b, i: (0, 0)),         # b_q
            ],
            out_specs=[
                pl.BlockSpec((1, C, TI), lambda b, i: (b, 0, i)),   # V
                pl.BlockSpec((1, Cq, TI), lambda b, i: (b, 0, i)),  # K
                pl.BlockSpec((1, TI, Cq), lambda b, i: (b, i, 0)),  # Q^T
            ],
        ),
        compiler_params=pltpu.CompilerParams(
            dimension_semantics=("parallel", "parallel"),
            vmem_limit_bytes=proj_vmem),
    )(xf, wv_b, bv_c, wk_b, bk_c, wqt_b, bq_r)

    # ---- Pass 2: attention, tiled over output columns. ---------------------
    attn_est = est_fn(TJ)
    attn_vmem = int(min(budget, max(32 * 1024 * 1024, int(attn_est * 1.5))))

    kernel = functools.partial(_attention_kernel, padded=padded, exp_dtype=exp_dtype)

    in_specs = [
        pl.BlockSpec((1, C, TJ), lambda b, j: (b, 0, j)),        # x residual tile
        pl.BlockSpec((1, C, N_pad), lambda b, j: (b, 0, 0)),     # V (full per batch)
        pl.BlockSpec((1, N_pad, Cq), lambda b, j: (b, 0, 0)),    # Q^T (full per batch)
        pl.BlockSpec((1, Cq, TJ), lambda b, j: (b, 0, j)),       # K tile
    ]
    args = [xf, v_b, qt_b, k_b]
    if padded:
        mask = jnp.where(jnp.arange(N_pad) < N, 0.0, -1e30)
        mask = mask.astype(jnp.float32).reshape(N_pad, 1)
        in_specs.append(pl.BlockSpec((N_pad, 1), lambda b, j: (0, 0)))
        args.append(mask)
    in_specs.append(pl.BlockSpec((1, 1), lambda b, j: (0, 0),
                                 memory_space=pltpu.MemorySpace.SMEM))   # gamma
    args.append(gamma_2)

    out_flat = pl.pallas_call(
        kernel,
        out_shape=jax.ShapeDtypeStruct((B, C, N_pad), x.dtype),
        grid_spec=pltpu.PrefetchScalarGridSpec(
            num_scalar_prefetch=0,
            grid=(B, NJ),
            in_specs=in_specs,
            out_specs=pl.BlockSpec((1, C, TJ), lambda b, j: (b, 0, j)),
        ),
        compiler_params=pltpu.CompilerParams(
            dimension_semantics=("parallel", "parallel"),
            vmem_limit_bytes=attn_vmem),
    )(*args)

    out = out_flat[:, :, :N] if padded else out_flat
    return out.reshape(B, C, H, W)


# ---------------------------------------------------------------------------
# Pure-JAX f32 reference mirroring the PyTorch forward.
# ---------------------------------------------------------------------------
def self_attention_reference(x, wq, bq, wk, bk, wv, bv, gamma):
    B, C, H, W = x.shape
    N = H * W
    f = x.reshape(B, C, N)
    q = jnp.einsum('oc,bcn->bon', wq, f) + bq[None, :, None]
    k = jnp.einsum('oc,bcn->bon', wk, f) + bk[None, :, None]
    v = jnp.einsum('oc,bcn->bon', wv, f) + bv[None, :, None]
    qk = jnp.einsum('bci,bcj->bij', q, k)          # bmm(query^T, key)
    attn = jax.nn.softmax(qk, axis=1)              # F.softmax(..., dim=1)
    out = jnp.einsum('bci,bij->bcj', v, attn)      # bmm(value, attention)
    return (gamma * out + f).reshape(B, C, H, W)


if __name__ == "__main__":
    B, C = 2, 32
    Cq = C // 8

    key = jax.random.PRNGKey(0)
    kx, kwq, kbq, kwk, kbk, kwv, kbv, kx2 = jax.random.split(key, 8)

    scale = 1.0 / jnp.sqrt(jnp.float32(C))
    # Conv1d(kernel=1) weights: torch shape (out, in, 1) stored here as (out, in).
    wq = jax.random.normal(kwq, (Cq, C), dtype=jnp.float32) * scale
    bq = jax.random.normal(kbq, (Cq,), dtype=jnp.float32) * scale
    wk = jax.random.normal(kwk, (Cq, C), dtype=jnp.float32) * scale
    bk = jax.random.normal(kbk, (Cq,), dtype=jnp.float32) * scale
    wv = jax.random.normal(kwv, (C, C), dtype=jnp.float32) * scale
    bv = jax.random.normal(kbv, (C,), dtype=jnp.float32) * scale
    # torch init for gamma is 0.0 (would make out == input); use a nonzero value
    # so the attention path is actually exercised.
    gamma = jnp.float32(0.5)

    # Case 1: H = W = 16 -> N = 256 (lane-dense, no padding path).
    x = jax.random.normal(kx, (B, C, 16, 16), dtype=jnp.float32)
    out = jax.block_until_ready(self_attention(x, wq, bq, wk, bk, wv, bv, gamma))
    ref = self_attention_reference(x, wq, bq, wk, bk, wv, bv, gamma)
    assert out.shape == x.shape
    # Tolerance reflects bf16 matmul operands / bf16 exp (f32 accumulation &
    # denominator) + approx reciprocal.
    assert jnp.allclose(out, ref, atol=5e-2, rtol=5e-2), "mismatch (unpadded case)"

    # Case 2: H = W = 10 -> N = 100, exercises the padded-row mask path.
    x2 = jax.random.normal(kx2, (B, C, 10, 10), dtype=jnp.float32)
    out2 = jax.block_until_ready(self_attention(x2, wq, bq, wk, bk, wv, bv, gamma))
    ref2 = self_attention_reference(x2, wq, bq, wk, bk, wv, bv, gamma)
    assert out2.shape == x2.shape
    assert jnp.allclose(out2, ref2, atol=5e-2, rtol=5e-2), "mismatch (padded case)"

    print("KERNEL_OK")
</pallas_src>

<mosaic_0001>
module attributes {stable_mosaic.version = 11 : i64} {
  func.func @_projection_kernel(%arg0: i32, %arg1: i32, %arg2: memref<1x32x256xf32, #tpu.memory_space<vmem>>, %arg3: memref<32x32xbf16, #tpu.memory_space<vmem>>, %arg4: memref<32x1xf32, #tpu.memory_space<vmem>>, %arg5: memref<4x32xbf16, #tpu.memory_space<vmem>>, %arg6: memref<4x1xf32, #tpu.memory_space<vmem>>, %arg7: memref<32x4xbf16, #tpu.memory_space<vmem>>, %arg8: memref<1x4xf32, #tpu.memory_space<vmem>>, %arg9: memref<1x32x256xbf16, #tpu.memory_space<vmem>>, %arg10: memref<1x4x256xbf16, #tpu.memory_space<vmem>>, %arg11: memref<1x256x4xbf16, #tpu.memory_space<vmem>>) attributes {dimension_semantics = [#tpu.dimension_semantics<parallel>, #tpu.dimension_semantics<parallel>], iteration_bounds = array<i64: 2, 1>, scalar_prefetch = 0 : i64, scratch_operands = 0 : i64, tpu.core_type = #tpu.core_type<tc>, window_params = [{transform_indices = @transform_0, window_bounds = array<i64: 1, 32, 256>}, {pipeline_mode = #tpu.pipeline_mode<synchronous>, transform_indices = @transform_1, window_bounds = array<i64: 32, 32>}, {pipeline_mode = #tpu.pipeline_mode<synchronous>, transform_indices = @transform_2, window_bounds = array<i64: 32, 1>}, {pipeline_mode = #tpu.pipeline_mode<synchronous>, transform_indices = @transform_3, window_bounds = array<i64: 4, 32>}, {pipeline_mode = #tpu.pipeline_mode<synchronous>, transform_indices = @transform_4, window_bounds = array<i64: 4, 1>}, {pipeline_mode = #tpu.pipeline_mode<synchronous>, transform_indices = @transform_5, window_bounds = array<i64: 32, 4>}, {pipeline_mode = #tpu.pipeline_mode<synchronous>, transform_indices = @transform_6, window_bounds = array<i64: 1, 4>}, {transform_indices = @transform_7, window_bounds = array<i64: 1, 32, 256>}, {transform_indices = @transform_8, window_bounds = array<i64: 1, 4, 256>}, {transform_indices = @transform_9, window_bounds = array<i64: 1, 256, 4>}]} {
    %c0 = arith.constant 0 : index
    %c0_0 = arith.constant 0 : index
    %c0_1 = arith.constant 0 : index
    %0 = vector.load %arg2[%c0, %c0_0, %c0_1] : memref<1x32x256xf32, #tpu.memory_space<vmem>>, vector<1x32x256xf32>
    %1 = vector.shape_cast %0 : vector<1x32x256xf32> to vector<32x256xf32>
    %2 = arith.truncf %1 : vector<32x256xf32> to vector<32x256xbf16>
    %c0_2 = arith.constant 0 : index
    %c0_3 = arith.constant 0 : index
    %3 = vector.load %arg3[%c0_2, %c0_3] : memref<32x32xbf16, #tpu.memory_space<vmem>>, vector<32x32xbf16>
    %cst = arith.constant dense<0.000000e+00> : vector<32x256xf32>
    %4 = tpu.matmul %3, %2, %cst {dimension_numbers = #tpu.dot_dimension_numbers<[1], [0], [0], [1], [0, 0, 1, 1], [], []>} : vector<32x32xbf16>, vector<32x256xbf16>, vector<32x256xf32> -> vector<32x256xf32>
    %c0_4 = arith.constant 0 : index
    %c0_5 = arith.constant 0 : index
    %5 = vector.load %arg4[%c0_4, %c0_5] : memref<32x1xf32, #tpu.memory_space<vmem>>, vector<32x1xf32>
    %6 = vector.broadcast %5 : vector<32x1xf32> to vector<32x256xf32>
    %7 = arith.addf %4, %6 : vector<32x256xf32>
    %c0_6 = arith.constant 0 : index
    %c0_7 = arith.constant 0 : index
    %8 = vector.load %arg5[%c0_6, %c0_7] : memref<4x32xbf16, #tpu.memory_space<vmem>>, vector<4x32xbf16>
    %cst_8 = arith.constant dense<0.000000e+00> : vector<4x256xf32>
    %9 = tpu.matmul %8, %2, %cst_8 {dimension_numbers = #tpu.dot_dimension_numbers<[1], [0], [0], [1], [0, 0, 1, 1], [], []>} : vector<4x32xbf16>, vector<32x256xbf16>, vector<4x256xf32> -> vector<4x256xf32>
    %c0_9 = arith.constant 0 : index
    %c0_10 = arith.constant 0 : index
    %10 = vector.load %arg6[%c0_9, %c0_10] : memref<4x1xf32, #tpu.memory_space<vmem>>, vector<4x1xf32>
    %11 = vector.broadcast %10 : vector<4x1xf32> to vector<4x256xf32>
    %12 = arith.addf %9, %11 : vector<4x256xf32>
    %c0_11 = arith.constant 0 : index
    %c0_12 = arith.constant 0 : index
    %13 = vector.load %arg7[%c0_11, %c0_12] : memref<32x4xbf16, #tpu.memory_space<vmem>>, vector<32x4xbf16>
    %cst_13 = arith.constant dense<0.000000e+00> : vector<256x4xf32>
    %14 = tpu.matmul %2, %13, %cst_13 {dimension_numbers = #tpu.dot_dimension_numbers<[0], [0], [1], [1], [0, 1, 1, 1], [], []>} : vector<32x256xbf16>, vector<32x4xbf16>, vector<256x4xf32> -> vector<256x4xf32>
    %c0_14 = arith.constant 0 : index
    %c0_15 = arith.constant 0 : index
    %15 = vector.load %arg8[%c0_14, %c0_15] : memref<1x4xf32, #tpu.memory_space<vmem>>, vector<1x4xf32>
    %16 = vector.broadcast %15 : vector<1x4xf32> to vector<256x4xf32>
    %17 = arith.addf %14, %16 : vector<256x4xf32>
    %18 = arith.truncf %7 : vector<32x256xf32> to vector<32x256xbf16>
    %c0_16 = arith.constant 0 : index
    %c0_17 = arith.constant 0 : index
    %c0_18 = arith.constant 0 : index
    %19 = vector.load %arg9[%c0_16, %c0_17, %c0_18] : memref<1x32x256xbf16, #tpu.memory_space<vmem>>, vector<1x32x256xbf16>
    %20 = vector.shape_cast %19 : vector<1x32x256xbf16> to vector<32x256xbf16>
    %21 = vector.shape_cast %18 : vector<32x256xbf16> to vector<1x32x256xbf16>
    tpu.vector_store %arg9[%c0_16, %c0_17, %c0_18], %21 {strides = array<i32>} : memref<1x32x256xbf16, #tpu.memory_space<vmem>>, vector<1x32x256xbf16>,
    %22 = arith.truncf %12 : vector<4x256xf32> to vector<4x256xbf16>
    %c0_19 = arith.constant 0 : index
    %c0_20 = arith.constant 0 : index
    %c0_21 = arith.constant 0 : index
    %23 = vector.load %arg10[%c0_19, %c0_20, %c0_21] : memref<1x4x256xbf16, #tpu.memory_space<vmem>>, vector<1x4x256xbf16>
    %24 = vector.shape_cast %23 : vector<1x4x256xbf16> to vector<4x256xbf16>
    %25 = vector.shape_cast %22 : vector<4x256xbf16> to vector<1x4x256xbf16>
    tpu.vector_store %arg10[%c0_19, %c0_20, %c0_21], %25 {strides = array<i32>} : memref<1x4x256xbf16, #tpu.memory_space<vmem>>, vector<1x4x256xbf16>,
    %26 = arith.truncf %17 : vector<256x4xf32> to vector<256x4xbf16>
    %c0_22 = arith.constant 0 : index
    %c0_23 = arith.constant 0 : index
    %c0_24 = arith.constant 0 : index
    %27 = vector.load %arg11[%c0_22, %c0_23, %c0_24] : memref<1x256x4xbf16, #tpu.memory_space<vmem>>, vector<1x256x4xbf16>
    %28 = vector.shape_cast %27 : vector<1x256x4xbf16> to vector<256x4xbf16>
    %29 = vector.shape_cast %26 : vector<256x4xbf16> to vector<1x256x4xbf16>
    tpu.vector_store %arg11[%c0_22, %c0_23, %c0_24], %29 {strides = array<i32>} : memref<1x256x4xbf16, #tpu.memory_space<vmem>>, vector<1x256x4xbf16>,
    return
  }
  func.func @transform_0(%arg0: i32, %arg1: i32) -> (i32, i32, i32) {
    %c0_i32 = arith.constant 0 : i32
    %c0_i32_0 = arith.constant 0 : i32
    return %arg0, %c0_i32, %arg1 : i32, i32, i32
  }
  func.func @transform_1(%arg0: i32, %arg1: i32) -> (i32, i32) {
    %c0_i32 = arith.constant 0 : i32
    %c0_i32_0 = arith.constant 0 : i32
    %c0_i32_1 = arith.constant 0 : i32
    return %c0_i32, %c0_i32_0 : i32, i32
  }
  func.func @transform_2(%arg0: i32, %arg1: i32) -> (i32, i32) {
    %c0_i32 = arith.constant 0 : i32
    %c0_i32_0 = arith.constant 0 : i32
    %c0_i32_1 = arith.constant 0 : i32
    return %c0_i32, %c0_i32_0 : i32, i32
  }
  func.func @transform_3(%arg0: i32, %arg1: i32) -> (i32, i32) {
    %c0_i32 = arith.constant 0 : i32
    %c0_i32_0 = arith.constant 0 : i32
    %c0_i32_1 = arith.constant 0 : i32
    return %c0_i32, %c0_i32_0 : i32, i32
  }
  func.func @transform_4(%arg0: i32, %arg1: i32) -> (i32, i32) {
    %c0_i32 = arith.constant 0 : i32
    %c0_i32_0 = arith.constant 0 : i32
    %c0_i32_1 = arith.constant 0 : i32
    return %c0_i32, %c0_i32_0 : i32, i32
  }
  func.func @transform_5(%arg0: i32, %arg1: i32) -> (i32, i32) {
    %c0_i32 = arith.constant 0 : i32
    %c0_i32_0 = arith.constant 0 : i32
    %c0_i32_1 = arith.constant 0 : i32
    return %c0_i32, %c0_i32_0 : i32, i32
  }
  func.func @transform_6(%arg0: i32, %arg1: i32) -> (i32, i32) {
    %c0_i32 = arith.constant 0 : i32
    %c0_i32_0 = arith.constant 0 : i32
    %c0_i32_1 = arith.constant 0 : i32
    return %c0_i32, %c0_i32_0 : i32, i32
  }
  func.func @transform_7(%arg0: i32, %arg1: i32) -> (i32, i32, i32) {
    %c0_i32 = arith.constant 0 : i32
    %c0_i32_0 = arith.constant 0 : i32
    return %arg0, %c0_i32, %arg1 : i32, i32, i32
  }
  func.func @transform_8(%arg0: i32, %arg1: i32) -> (i32, i32, i32) {
    %c0_i32 = arith.constant 0 : i32
    %c0_i32_0 = arith.constant 0 : i32
    return %arg0, %c0_i32, %arg1 : i32, i32, i32
  }
  func.func @transform_9(%arg0: i32, %arg1: i32) -> (i32, i32, i32) {
    %c0_i32 = arith.constant 0 : i32
    %c0_i32_0 = arith.constant 0 : i32
    return %arg0, %arg1, %c0_i32 : i32, i32, i32
  }
}

</mosaic_0001>

<bundles_post_ra>
// kernel: tpu_custom_call.1
= control target key start
LH: loop header
LB: loop body
LE: loop exit
PB: predicated region body
PF: predicated region fallthrough
CT: control target
= control target key end

     0   :  { %s2073_s0 = inlined_call_operand.hbm [shape: f32[2,32,256], index: 0, kind: input, shape index: {}]   ;;  %s2074_s1 = inlined_call_operand.vmem [shape: bf16[32,32], index: 1, kind: input, shape index: {}]   ;;  %s2075_s2 = inlined_call_operand.vmem [shape: f32[32,1], index: 2, kind: input, shape index: {}]   ;;  %s2076_s3 = inlined_call_operand.vmem [shape: bf16[4,32], index: 3, kind: input, shape index: {}]   ;;  %s2077_s4 = inlined_call_operand.vmem [shape: f32[4,1], index: 4, kind: input, shape index: {}]   ;;  %s2078_s5 = inlined_call_operand.vmem [shape: bf16[32,4], index: 5, kind: input, shape index: {}]   ;;  %s2079_s6 = inlined_call_operand.vmem [shape: f32[1,4], index: 6, kind: input, shape index: {}]   ;;  %s2080_s7 = inlined_call_operand.hbm [shape: bf16[2,32,256], index: 7, kind: output, shape index: {0}]   ;;  %s2081_s8 = inlined_call_operand.hbm [shape: bf16[2,4,256], index: 8, kind: output, shape index: {1}]   ;;  %s2082_s9 = inlined_call_operand.vmem [shape: bf16[2,256,4], index: 9, kind: output, shape index: {2}]  }
   0x1   :  { %2085 = sst [smem:[#allocation12_spill]] %s2073_s0 }
   0x2   :  { %2086 = sst [smem:[#allocation13_spill]] %s2074_s1 }
   0x3   :  { %2087 = sst [smem:[#allocation14_spill]] %s2075_s2 }
   0x4   :  { %2088 = sst [smem:[#allocation15_spill]] %s2076_s3 }
   0x5   :  { %2089 = sst [smem:[#allocation16_spill]] %s2077_s4 }
   0x6   :  { %15 = vsyncpa [#allocation3], 0 }
   0x7   :  { %17 = vsyncpa [#allocation3 + $0x1], 0 }
   0x8   :  { %18 = vsyncpa [#allocation4], 0 }
   0x9   :  { %20 = vsyncpa [#allocation4 + $0x1], 0 }
   0xa   :  { %21 = vsyncpa [#allocation7], 0 }
   0xb   :  { %23 = vsyncpa [#allocation7 + $0x1], 0  ;;  %s1709_s30 = smov 0   ;;  %s1711_s10 = smov 0  }
   0xc   :  { %s1713_s11 = smov 0   ;;  %s1715_s12 = smov 0  }
   0xd   :  { %s1717_s13 = smov 0   ;;  %s1719_s14 = smov 0  }
   0xe LB: > { %s1246_s15 = sadd.s32 4294967295, %s1649_s14   ;;  %s1247_s16 = sadd.s32 4294967294, %s1649_s14   ;;  %s1649_s14 = sphi %s1719_s14, %s29_s14   ;;  %s1645_s13 = sphi %s1717_s13, %s2111_s13   ;;  %s1641_s12 = sphi %s1715_s12, %s2110_s12   ;;  %s1637_s11 = sphi %s1713_s11, %s2109_s11   ;;  %s1633_s10 = sphi %s1711_s10, %s2108_s10   ;;  %s1629_s30 = sphi %s1709_s30, %s2107_s30  }
   0xf   : > { %s41_s17 = sadd.s32 1, %s1645_s13  ;;  %s50_s18 = sadd.s32 1, %s1637_s11 }
  0x10   : > { %p43_p0 = scmp.ge.s32.totalorder %s41_s17, 2  ;;  %p57_p1 = scmp.ne.s32.totalorder %s1637_s11, %s1633_s10 }
  0x11   : > { %p58_p2 = scmp.eq.s32.totalorder %s1649_s14, 0  ;;  %p63_p3 = scmp.ne.s32.totalorder %s1633_s10, %s1629_s30 }
  0x12   : > { %s2113_s17 = smov (%p43_p0, %s41_s17), 0  ;;  %p64_p5 = scmp.eq.s32.totalorder %s1246_s15, 0 }
  0x13   : > { %2090 = sst [smem:[#allocation11_spill]] %s2113_s17  ;;  %p1750_p4 = por %p58_p2, %p57_p1 }
  0x14   : > { %s45_s20 = ssub.s32 %s1645_s13, %s2113_s17  ;;  %p215_p6 = scmp.eq.s32.totalorder %s1246_s15, 1 }
  0x15   : > { %p48_p7 = scmp.eq.s32.totalorder %s45_s20, 0  ;;  %p1756_p8 = por %p64_p5, %p63_p3 }
  0x16   : > { %p1760_p9 = por %p215_p6, %p57_p1  ;;  %p221_p10 = scmp.eq.s32.totalorder %s1247_s16, 1 }
  0x17   : > { %s1765_s23 = scalar_select %p48_p7, %s1637_s11, %s50_s18  }
  0x18   : > { %s2093_s22 = scalar_select %p1760_p9, 1, 0 }
  0x19   : > { %p1767_p11 = por %p221_p10, %p63_p3  ;;  %p1444_p13 = scmp.lt.s32.totalorder %s1649_s14, 2 }
  0x1a   : > { %s315_s25 = sand.u32 1, %s1637_s11   ;;  %s1329_s27 = sshll.u32 %s1645_s13, 10 }
  0x1b   : > { %s2094_s24 = scalar_select %p1767_p11, 1, 0 }
  0x1c   : > { %s1250_s26 = sshll.u32 %s315_s25, 6  ;;  %s2095_s0 = sld [smem:[#allocation12_spill]] }
  0x1d   : > { %s319_s16 = scalar_lea.vmem [#allocation2], %s1250_s26  ;;  %p1784_p0 = pnand %p1444_p13, %p1750_p4 }
  0x1e   : > { %s328_s18 = sshll.u32 %s319_s16, 4  ;;  %s1789_s17 = scalar_lea.sflag [#allocation3], %s315_s25  ;;  %s1780_s18 = int_to_ptr.vmem [resolvable:$true] %s328_s18 }
  0x1f   : > { %p1507_p3 = pneg %p1784_p0 }
  0x22   : > { %s1778_s15 = scalar_lea.hbm %s2095_s0, %s1329_s27  ;;  %s1510_s19 = scalar_lea.hbm %s2095_s0, 2048 }
  0x23   : > { %s1505_s27 = scalar_lea.hbm %s1778_s15, 1024  ;;  %p1511_p4 = scmp.lt.u32.totalorder %s1778_s15, %s2095_s0 }
  0x24   : > { %p1506_p2 = scmp.ne.s32.totalorder %s1778_s15, %s1505_s27  ;;  %p1512_p7 = scmp.lt.u32.totalorder %s1510_s19, %s1505_s27 }
  0x25   : > { %p1514_p13 = scmp.lt.u32.totalorder %s1505_s27, %s1778_s15 }
  0x26   : > { %p1508_p5 = pnand %p1507_p3, %p1506_p2  ;;  %p1513_p10 = por %p1512_p7, %p1511_p4 }
  0x28   : > { %p1509_p6 = pneg %p1508_p5  ;;  %p1515_p12 = por %p1514_p13, %p1513_p10 }
  0x2a   : > { %p1516_p1 = pnand %p1515_p12, %p1509_p6 }
  0x2c   : > { %1519 = shalt.err (!%p1516_p1)
}
  0x2d   : > { %s1520_s25 = scalar_lea.vmem %s1780_s18, 1024  ;;  %s1651_s26 = smov [#allocation2]  }
  0x2e   : > { %p1521_p2 = scmp.ne.s32.totalorder %s1780_s18, %s1520_s25  ;;  %s1525_s28 = sshll.u32 %s1651_s26, 4  ;;  %s1526_s28 = int_to_ptr.vmem [resolvable:$false] %s1525_s28 }
  0x2f   : > { %s1527_s29 = scalar_lea.vmem %s1526_s28, 2048  ;;  %p1528_p9 = scmp.lt.s32.totalorder %s1780_s18, %s1526_s28 }
  0x30   : > { %p1523_p5 = pnand %p1521_p2, %p1507_p3  ;;  %p1529_p4 = scmp.lt.s32.totalorder %s1527_s29, %s1520_s25 }
  0x32   : > { %p1524_p11 = pneg %p1523_p5  ;;  %p1530_p7 = por %p1529_p4, %p1528_p9 }
  0x34   : > { %p1531_p10 = pnand %p1530_p7, %p1524_p11 }
  0x36   : > { %1534 = shalt.err (!%p1531_p10)
}
  0x37   : > { %s1652_s27 = smov 256   ;;  %s1653_s19 = smov 16  }
  0x38   : > { %1436 = dma.hbm_to_vmem [thread:$0]  (!%p1784_p0), %s1778_s15, 1024, %s1780_s18, %s1789_s17, %s1652_s27, %s1652_s27, %s1653_s19  }
  0x39   : > { %p336_p12 = scmp.lt.s32.totalorder %s1649_s14, 3  ;;  %p2097_p1 = scmp.ge.s32.totalorder %s1649_s14, 1 }
  0x3b   : > { %p337_p3 = pnand %p2097_p1, %p336_p12 }
  0x3c   : > { %s1821_s16 = sand.u32 (!%p337_p3), 1, %s1633_s10  }
  0x3d   : > { %340 = sbr.rel (%p337_p3) target bundleno = 456 (0x1c8), region = 48  ;;  %s1254_s25 = sshll.u32 (!%p337_p3), %s1821_s16, 6 }
  0x3e   : > { %s343_s26 = scalar_lea.sflag (!%p337_p3), [#allocation3], %s1821_s16  ;;  %s346_s28 = scalar_lea.vmem (!%p337_p3), [#allocation2], %s1254_s25 }
  0x44   : > { %1616 = dma.done.wait (%p1756_p8), %s343_s26, 1024  }
  0x45   : > { %1618 = vsyncadd (%p1756_p8), %s343_s26, 4294966272  ;;  %v1654_v0 = vmov 0   ;;  %v409_v1 = vld [vmem:[%s346_s28] sm:$0xff]  ;;  %v411_v2 = vld [vmem:[%s346_s28 + $0x10] sm:$0xff]  ;;  %s2098_s1 = sld [smem:[#allocation13_spill]]  ;;  %vm459_vm0 = vcmask 261120  }
  0x46   : > { %498 = vmatprep.mubr.bf16.mxu0 %v1654_v0  ;;  %561 = vmatprep.mubr.bf16.mxu1 %v1654_v0  ;;  %v413_v3 = vld [vmem:[%s346_s28 + $0x20] sm:$0xff]  ;;  %v417_v4 = vpack.c.bf16 %v411_v2, %v409_v1  ;;  %v415_v5 = vld [vmem:[%s346_s28 + $0x30] sm:$0xff]  ;;  %v410_v6 = vld [vmem:[%s346_s28 + $0x8] sm:$0xff]  ;;  %s2099_s3 = sld [smem:[#allocation15_spill]]  ;;  %s2100_s2 = sld [smem:[#allocation14_spill]] }
  0x47   : > { %v412_v7 = vld [vmem:[%s346_s28 + $0x18] sm:$0xff]  ;;  %v414_v9 = vld [vmem:[%s346_s28 + $0x28] sm:$0xff]  ;;  %v419_v11 = vpack.c.bf16 %v415_v5, %v413_v3  ;;  %v1503_v13 = vld [vmem:[%s2078_s5] sm:$0xff]   ;;  %s2101_s4 = sld [smem:[#allocation16_spill]]  ;;  %s1255_s26 = sshll.u32 %s1821_s16, 5 }
  0x48   : > { %v418_v8 = vpack.c.bf16 %v412_v7, %v410_v6  ;;  %v416_v10 = vld [vmem:[%s346_s28 + $0x38] sm:$0xff]  ;;  %581 = vxpose.xlu0.c.b16.start [1/2] (short) %v417_v4, 128  ;;  %v1504_v15 = vld [vmem:[%s2078_s5 + $0x8] sm:$0xff]   ;;  %s1256_s28 = sshll.u32 %s1821_s16, 2  ;;  %s376_s17 = scalar_lea.vmem [#allocation5], %s1255_s26 }
  0x49   : > { %v420_v12 = vpack.c.bf16 %v416_v10, %v414_v9  ;;  %s1880_s21 = scalar_lea.vmem [#allocation6], %s1256_s28  ;;  %s1067_s15 = sshll.u32 %s376_s17, 4  ;;  %s1883_s15 = int_to_ptr.vmem [resolvable:$true] %s1067_s15 }
  0x4a   : > { %597 = vxpose.xlu1.c.b16.start [1/2] (short) %v418_v8, 128  ;;  %466 = vmatprep.subr.bf16.mxu0 %v418_v8  ;;  %s1367_s18 = sshll.u32 %s1641_s12, 9  ;;  %s1038_s25 = scalar_lea.sflag [#allocation4], %s1821_s16 }
  0x4b   : > { %467 = vmatpush1.bf16.msra.mxu0 %v417_v4  ;;  %529 = vmatprep.subr.bf16.mxu1 %v418_v8  ;;  %v1501_v14 = vld [vmem:[%s2098_s1] sm:$0xff]   ;;  %v1502_v17 = vld [vmem:[%s2098_s1 + $0x8] sm:$0xff]   ;;  %s1890_s19 = scalar_lea.hbm %s2080_s7, %s1367_s18  ;;  %s1535_s26 = scalar_lea.vmem %s1883_s15, 512 }
  0x4c   : > { %468 = vmatprep.subr.bf16.mxu0 %v420_v12  ;;  %530 = vmatpush1.bf16.msra.mxu1 %v417_v4  ;;  %v519_v16 = vld [vmem:[%s2099_s3] sm:$0x3]  ;;  %v426_v19 = vld [vmem:[%s2100_s2 + $0x8] sm:$0xff]  ;;  %v427_v20 = vld [vmem:[%s2100_s2 + $0x10] sm:$0xff]  ;;  %p1536_p8 = scmp.ne.s32.totalorder %s1883_s15, %s1535_s26  ;;  %p2102_p9 = scmp.ne.s32.totalorder %s2093_s22, 0 }
  0x4d   : > { %582 = vxpose.xlu0.c.b16.end [2/2] (short) %v419_v11, 128  ;;  %531 = vmatprep.subr.bf16.mxu1 %v420_v12  ;;  %v425_v18 = vld [vmem:[%s2100_s2] sm:$0xff]  ;;  %v428_v22 = vld [vmem:[%s2100_s2 + $0x18] sm:$0xff]  ;;  %s1655_s28 = smov [#allocation5]  }
  0x4e   : > { %598 = vxpose.xlu1.c.b16.end [2/2] (short) %v420_v12, 128  ;;  %v520_v21 = vld [vmem:[%s2101_s4] sm:$0xf]  ;;  %p1537_p11 = pnand %p1536_p8, %p2102_p9 }
  0x4f   : > { %469 = vmatpush1.bf16.msra.mxu0 %v419_v11 }
  0x50   : > { %1387 = vmatprep.subr.bf16.mxu0 %v1503_v13  ;;  %532 = vmatpush1.bf16.msra.mxu1 %v419_v11  ;;  %p1538_p0 = pneg %p1537_p11 }
  0x51   : > { %1423 = vmatprep.subr.bf16.mxu1 %v1503_v13 }
  0x52   : > { %1261 = vmatmul.mubr.msk.bf16.vlgmr.msra.gmra.mrb[0].mxu0 %vm459_vm0, %v1501_v14  ;;  %1500 = vset.pattern.permute.xlu1 %v1654_v0 }
  0x53   : > { %508 = vmatprep.mubr.bf16.mxu0 %v1654_v0  ;;  %1388 = vmatpush3.bf16.msra.mxu0 %v1503_v13 }
  0x54   : > { %1389 = vmatprep.subr.bf16.mxu0 %v1504_v15  ;;  %1263 = vmatmul.mubr.msk.bf16.vlgmr.msra.gmra.mrb[0].mxu1 %vm459_vm0, %v519_v16 }
  0x55   : > { %1425 = vmatpush3.bf16.msra.mxu1 %v1503_v13 }
  0x56   : > { %1424 = vmatprep.subr.bf16.mxu1 %v1504_v15  ;;  %1499 = vset.pattern.permute.xlu0 %v1654_v0 }
  0x57   : > { %1390 = vmatpush3.bf16.msra.mxu0 %v1504_v15 }
  0x59   : > { %1426 = vmatpush3.bf16.msra.mxu1 %v1504_v15 }
  0x5a   : > { %1262 = vmatmul.mubr.msk.bf16.gmra.mrb[4].mxu0 %vm459_vm0, %v1502_v17 }
  0x6a   : > { %436 = vperm.xlu1 %1500, %v426_v19  }
  0x6e   : > { %431 = vperm.xlu0 %1499, %v425_v18   ;;  %441 = vperm.xlu1 %1500, %v427_v20  }
  0x72   : > { %523 = vperm.xlu0 %1499, %v520_v21   ;;  %446 = vperm.xlu1 %1500, %v428_v22  }
  0xaf   : > { %v589_v23 = vpop.trf.xlu0 }
  0xb0   : > { %1391 = vmatprep.mubr.msk.bf16.mxu0 %vm459_vm0, %v589_v23  ;;  %v605_v27 = vpop.trf.xlu1 }
  0xb3   : > { %v590_v24 = vpop.trf.xlu0 }
  0xb4   : > { %1392 = vmatmul.mubr.msk.bf16.vlgmr.msra.gmra.mrb[8].mxu0 %vm459_vm0, %v590_v24  ;;  %v606_v30 = vpop.trf.xlu1 }
  0xb7   : > { %v591_v25 = vpop.trf.xlu0 }
  0xb8   : > { %1395 = vmatprep.mubr.msk.bf16.mxu0 %vm459_vm0, %v591_v25  ;;  %v607_v32 = vpop.trf.xlu1 }
  0xbb   : > { %v592_v26 = vpop.trf.xlu0 }
  0xbc   : > { %1396 = vmatmul.mubr.msk.bf16.gmra.mrb[12].mxu0 %vm459_vm0, %v592_v26  ;;  %v608_v34 = vpop.trf.xlu1 }
  0xbf   : > { %v593_v28 = vpop.trf.xlu0 }
  0xc0   : > { %1399 = vmatprep.mubr.msk.bf16.mxu0 %vm459_vm0, %v593_v28  ;;  %v609_v35 = vpop.trf.xlu1 }
  0xc3   : > { %v594_v29 = vpop.trf.xlu0 }
  0xc4   : > { %1400 = vmatmul.mubr.msk.bf16.gmra.mrb[16].mxu0 %vm459_vm0, %v594_v29  ;;  %v610_v36 = vpop.trf.xlu1 }
  0xc7   : > { %v595_v31 = vpop.trf.xlu0 }
  0xc8   : > { %1403 = vmatprep.mubr.msk.bf16.mxu1 %vm459_vm0, %v595_v31  ;;  %v611_v37 = vpop.trf.xlu1 }
  0xcb   : > { %v596_v33 = vpop.trf.xlu0 }
  0xcc   : > { %1404 = vmatmul.mubr.msk.bf16.vlgmr.msra.gmra.mrb[4].mxu1 %vm459_vm0, %v596_v33  ;;  %v612_v38 = vpop.trf.xlu1 }
  0xcd   : > { %1407 = vmatprep.mubr.msk.bf16.mxu1 %vm459_vm0, %v605_v27 }
  0xd4   : > { %1408 = vmatmul.mubr.msk.bf16.gmra.mrb[8].mxu1 %vm459_vm0, %v606_v30 }
  0xd5   : > { %1411 = vmatprep.mubr.msk.bf16.mxu1 %vm459_vm0, %v607_v32 }
  0xdc   : > { %1412 = vmatmul.mubr.msk.bf16.gmra.mrb[12].mxu1 %vm459_vm0, %v608_v34 }
  0xdd   : > { %1415 = vmatprep.mubr.msk.bf16.mxu1 %vm459_vm0, %v609_v35 }
  0xe4   : > { %1416 = vmatmul.mubr.msk.bf16.gmra.mrb[16].mxu1 %vm459_vm0, %v610_v36 }
  0xe5   : > { %1419 = vmatprep.mubr.msk.bf16.mxu1 %vm459_vm0, %v611_v37 }
  0xe9   : > { %v437_v40 = vpop.permute.xlu1 %436 }
  0xec   : > { %1420 = vmatmul.mubr.msk.bf16.gmra.mrb[20].mxu1 %vm459_vm0, %v612_v38 }
  0xed   : > { %v432_v39 = vpop.permute.xlu0 %431  ;;  %v442_v45 = vpop.permute.xlu1 %441 }
  0xf1   : > { %v524_v42 = vpop.permute.xlu0 %523  ;;  %v447_v61 = vpop.permute.xlu1 %446 }
 0x125   : > { %v500_v41 = vpop.f32.mrb[0].mxu0 }
 0x126   : > { %v502_v43 = vpop.f32.mrb[1].mxu0  ;;  %v501_v44 = vadd.f32 %v500_v41, %v432_v39 }
 0x127   : > { %v504_v46 = vpop.f32.mrb[2].mxu0  ;;  %v503_v47 = vadd.f32 %v502_v43, %v432_v39  ;;  %v563_v48 = vpop.f32.mrb[0].mxu1 }
 0x128   : > { %v506_v49 = vpop.f32.mrb[3].mxu0  ;;  %v565_v50 = vpop.f32.mrb[1].mxu1  ;;  %v564_v51 = vadd.f32 %v563_v48, %v524_v42  ;;  %v505_v52 = vadd.f32 %v504_v46, %v437_v40 }
 0x129   : > { %v1331_v53 = vpack.c.bf16 %v503_v47, %v501_v44  ;;  %v567_v54 = vpop.f32.mrb[2].mxu1  ;;  %v566_v55 = vadd.f32 %v565_v50, %v524_v42  ;;  %v507_v56 = vadd.f32 %v506_v49, %v437_v40 }
 0x12a   : > { %v568_v57 = vpop.f32.mrb[3].mxu1 }
 0x12b   : > { %858 = vst [vmem:[%s376_s17] sm:$0xff] %v1331_v53  ;;  %v1287_v58 = vpack.c.bf16 %v566_v55, %v564_v51  ;;  %v1332_v59 = vpack.c.bf16 %v507_v56, %v505_v52 }
 0x12d   : > { %v510_v60 = vpop.f32.mrb[4].mxu0  ;;  %859 = vst [vmem:[%s376_s17 + $0x8] sm:$0xff] %v1332_v59  ;;  %1288 = vst.sshfl [vmem:[%s1880_s21] sm:$0x33 pattern:$0x76325410] %v1287_v58 }
 0x12e   : > { %v512_v62 = vpop.f32.mrb[5].mxu0  ;;  %v511_v63 = vadd.f32 %v510_v60, %v442_v45 }
 0x12f   : > { %v514_v0 = vpop.f32.mrb[6].mxu0  ;;  %v513_v1 = vadd.f32 %v512_v62, %v442_v45 }
 0x130   : > { %v516_v2 = vpop.f32.mrb[7].mxu0  ;;  %v515_v3 = vadd.f32 %v514_v0, %v447_v61 }
 0x131   : > { %v1333_v4 = vpack.c.bf16 %v513_v1, %v511_v63  ;;  %v517_v5 = vadd.f32 %v516_v2, %v447_v61 }
 0x133   : > { %860 = vst [vmem:[%s376_s17 + $0x10] sm:$0xff] %v1333_v4  ;;  %v1334_v6 = vpack.c.bf16 %v517_v5, %v515_v3 }
 0x135   : > { %861 = vst [vmem:[%s376_s17 + $0x18] sm:$0xff] %v1334_v6  ;;  %s1539_s17 = sshll.u32 %s1655_s28, 4  ;;  %s1540_s17 = int_to_ptr.vmem [resolvable:$false] %s1539_s17 }
 0x136   : > { %s1541_s0 = scalar_lea.vmem %s1540_s17, 1024  ;;  %p1542_p6 = scmp.lt.s32.totalorder %s1883_s15, %s1540_s17 }
 0x137   : > { %p1543_p13 = scmp.lt.s32.totalorder %s1541_s0, %s1535_s26 }
 0x139   : > { %p1544_p2 = por %p1543_p13, %p1542_p6 }
 0x13b   : > { %p1545_p5 = pnand %p1544_p2, %p1538_p0 }
 0x13d   : > { %1548 = shalt.err (!%p1545_p5)
}
 0x13e   : > { %s1549_s18 = scalar_lea.hbm %s1890_s19, 512  ;;  %s1553_s28 = scalar_lea.hbm %s2080_s7, 1024 }
 0x13f   : > { %p1550_p4 = scmp.ne.s32.totalorder %s1890_s19, %s1549_s18  ;;  %p1554_p12 = scmp.lt.u32.totalorder %s1890_s19, %s2080_s7 }
 0x140   : > { %p1555_p1 = scmp.lt.u32.totalorder %s1553_s28, %s1549_s18  ;;  %p1557_p8 = scmp.lt.u32.totalorder %s1549_s18, %s1890_s19 }
 0x141   : > { %p1551_p7 = pnand %p1550_p4, %p2102_p9 }
 0x142   : > { %p1556_p3 = por %p1555_p1, %p1554_p12 }
 0x143   : > { %p1552_p10 = pneg %p1551_p7 }
 0x144   : > { %p1558_p11 = por %p1557_p8, %p1556_p3 }
 0x146   : > { %p1559_p0 = pnand %p1558_p11, %p1552_p10 }
 0x148   : > { %1562 = shalt.err (!%p1559_p0)
}
 0x149   : > { %s1656_s0 = smov 128   ;;  %s1657_s26 = smov 8  }
 0x14a   : > { %1429 = dma.vmem_to_hbm [thread:$0]  (%p2102_p9), %s1883_s15, 512, %s1890_s19, %s1038_s25, %s1656_s0, %s1656_s0, %s1657_s26  }
 0x14b   : > { %s2103_s20 = sshll.u32 %s1641_s12, 6  ;;  %s1086_s28 = sshll.u32 %s1880_s21, 4  ;;  %s1087_s28 = int_to_ptr.vmem [resolvable:$true] %s1086_s28 }
 0x14c   : > { %s1921_s18 = scalar_lea.hbm %s2081_s8, %s2103_s20  ;;  %s1043_s17 = scalar_lea.sflag [#allocation7], %s1821_s16 }
 0x14d   : > { %s1563_s1 = scalar_lea.vmem %s1087_s28, 64  ;;  %s1658_s2 = smov [#allocation6]  }
 0x14e   : > { %p1564_p6 = scmp.ne.s32.totalorder %s1087_s28, %s1563_s1  ;;  %s1567_s3 = sshll.u32 %s1658_s2, 4  ;;  %s1568_s3 = int_to_ptr.vmem [resolvable:$false] %s1567_s3 }
 0x14f   : > { %s1569_s4 = scalar_lea.vmem %s1568_s3, 128  ;;  %p1570_p5 = scmp.lt.s32.totalorder %s1087_s28, %s1568_s3 }
 0x150   : > { %p1565_p13 = pnand %p1564_p6, %p2102_p9  ;;  %p1571_p4 = scmp.lt.s32.totalorder %s1569_s4, %s1563_s1 }
 0x152   : > { %p1566_p2 = pneg %p1565_p13  ;;  %p1572_p7 = por %p1571_p4, %p1570_p5 }
 0x154   : > { %p1573_p10 = pnand %p1572_p7, %p1566_p2 }
 0x156   : > { %1576 = shalt.err (!%p1573_p10)
}
 0x157   : > { %s1577_s16 = scalar_lea.hbm %s1921_s18, 64  ;;  %s1581_s2 = scalar_lea.hbm %s2081_s8, 128 }
 0x158   : > { %p1578_p12 = scmp.ne.s32.totalorder %s1921_s18, %s1577_s16  ;;  %p1582_p8 = scmp.lt.u32.totalorder %s1921_s18, %s2081_s8 }
 0x159   : > { %p1583_p11 = scmp.lt.u32.totalorder %s1581_s2, %s1577_s16  ;;  %p1585_p6 = scmp.lt.u32.totalorder %s1577_s16, %s1921_s18 }
 0x15a   : > { %p1579_p1 = pnand %p1578_p12, %p2102_p9 }
 0x15b   : > { %p1584_p0 = por %p1583_p11, %p1582_p8 }
 0x15c   : > { %p1580_p3 = pneg %p1579_p1 }
 0x15d   : > { %p1586_p13 = por %p1585_p6, %p1584_p0 }
 0x15f   : > { %p1587_p2 = pnand %p1586_p13, %p1580_p3 }
 0x161   : > { %1590 = shalt.err (!%p1587_p2)
}
 0x162   : > { %1430 = dma.vmem_to_hbm [thread:$0]  (%p2102_p9), %s1087_s28, 64, %s1921_s18, %s1043_s17   ;;  %v1947_v7 = vld [vmem:[%s2079_s6] ss:$0 sm:$0xff]  ;;  %vm1004_vm1 = vcmask 27648  }
 0x163   : > { %p399_p5 = scmp.lt.s32.totalorder %s1641_s12, 1 }
 0x165   : > { %s2115_s12 = smov (!%p399_p5, %s1641_s12), 1 }
 0x166   : > { %s1330_s25 = sshll.u32 %s2115_s12, 7 }
 0x167   : > { %s1953_s22 = scalar_lea.vmem %s2082_s9, %s1330_s25 }
 0x187   : > { %v1393_v8 = vpop.f32.mrb[8].mxu0 }
 0x188   : > { %v716_v9 = vadd.f32 %v1393_v8, %v1947_v7  ;;  %v707_v10 = vpop.f32.mrb[9].mxu0 }
 0x189   : > { %v708_v11 = vadd.f32 %v1947_v7, %v707_v10  ;;  %v1394_v12 = vpop.f32.mrb[10].mxu0 }
 0x18a   : > { %v1337_v13 = vpack.c.bf16 %v716_v9, %v716_v9  ;;  %v719_v14 = vadd.f32 %v1394_v12, %v1947_v7  ;;  %v710_v15 = vpop.f32.mrb[11].mxu0 }
 0x18b   : > { %v1335_v16 = vpack.c.bf16 %v708_v11, %v708_v11  ;;  %v711_v17 = vadd.f32 %v1947_v7, %v710_v15 }
 0x18c   : > { %1007 = vst.msk [vmem:[%s1953_s22 + $0x8] sm:$0xf] %vm1004_vm1, %v1337_v13  ;;  %v1338_v18 = vpack.c.bf16 %v719_v14, %v719_v14 }
 0x18d   : > { %1005 = vst.msk [vmem:[%s1953_s22] sm:$0xf] %vm1004_vm1, %v1335_v16  ;;  %v1336_v19 = vpack.c.bf16 %v711_v17, %v711_v17 }
 0x18e   : > { %1008 = vst.msk [vmem:[%s1953_s22 + $0xc] sm:$0xf] %vm1004_vm1, %v1338_v18 }
 0x18f   : > { %1006 = vst.msk [vmem:[%s1953_s22 + $0x4] sm:$0xf] %vm1004_vm1, %v1336_v19  ;;  %v1397_v20 = vpop.f32.mrb[12].mxu0 }
 0x190   : > { %v732_v21 = vadd.f32 %v1397_v20, %v1947_v7  ;;  %v723_v22 = vpop.f32.mrb[13].mxu0 }
 0x191   : > { %v724_v23 = vadd.f32 %v1947_v7, %v723_v22  ;;  %v1398_v24 = vpop.f32.mrb[14].mxu0 }
 0x192   : > { %v1341_v25 = vpack.c.bf16 %v732_v21, %v732_v21  ;;  %v735_v26 = vadd.f32 %v1398_v24, %v1947_v7  ;;  %v726_v27 = vpop.f32.mrb[15].mxu0 }
 0x193   : > { %v1339_v28 = vpack.c.bf16 %v724_v23, %v724_v23  ;;  %v727_v29 = vadd.f32 %v1947_v7, %v726_v27 }
 0x194   : > { %1011 = vst.msk [vmem:[%s1953_s22 + $0x18] sm:$0xf] %vm1004_vm1, %v1341_v25  ;;  %v1342_v30 = vpack.c.bf16 %v735_v26, %v735_v26 }
 0x195   : > { %1009 = vst.msk [vmem:[%s1953_s22 + $0x10] sm:$0xf] %vm1004_vm1, %v1339_v28  ;;  %v1340_v31 = vpack.c.bf16 %v727_v29, %v727_v29 }
 0x196   : > { %1012 = vst.msk [vmem:[%s1953_s22 + $0x1c] sm:$0xf] %vm1004_vm1, %v1342_v30 }
 0x197   : > { %1010 = vst.msk [vmem:[%s1953_s22 + $0x14] sm:$0xf] %vm1004_vm1, %v1340_v31  ;;  %v1401_v32 = vpop.f32.mrb[16].mxu0 }
 0x198   : > { %v748_v33 = vadd.f32 %v1401_v32, %v1947_v7  ;;  %v739_v34 = vpop.f32.mrb[17].mxu0 }
 0x199   : > { %v740_v35 = vadd.f32 %v1947_v7, %v739_v34  ;;  %v1402_v36 = vpop.f32.mrb[18].mxu0 }
 0x19a   : > { %v1345_v37 = vpack.c.bf16 %v748_v33, %v748_v33  ;;  %v751_v38 = vadd.f32 %v1402_v36, %v1947_v7  ;;  %v742_v39 = vpop.f32.mrb[19].mxu0 }
 0x19b   : > { %v1343_v40 = vpack.c.bf16 %v740_v35, %v740_v35  ;;  %v743_v41 = vadd.f32 %v1947_v7, %v742_v39 }
 0x19c   : > { %1015 = vst.msk [vmem:[%s1953_s22 + $0x28] sm:$0xf] %vm1004_vm1, %v1345_v37  ;;  %v1346_v42 = vpack.c.bf16 %v751_v38, %v751_v38 }
 0x19d   : > { %1013 = vst.msk [vmem:[%s1953_s22 + $0x20] sm:$0xf] %vm1004_vm1, %v1343_v40  ;;  %v1344_v43 = vpack.c.bf16 %v743_v41, %v743_v41 }
 0x19e   : > { %1016 = vst.msk [vmem:[%s1953_s22 + $0x2c] sm:$0xf] %vm1004_vm1, %v1346_v42 }
 0x19f   : > { %1014 = vst.msk [vmem:[%s1953_s22 + $0x24] sm:$0xf] %vm1004_vm1, %v1344_v43  ;;  %v1405_v44 = vpop.f32.mrb[4].mxu1 }
 0x1a0   : > { %v764_v45 = vadd.f32 %v1405_v44, %v1947_v7  ;;  %v755_v46 = vpop.f32.mrb[5].mxu1 }
 0x1a1   : > { %v756_v47 = vadd.f32 %v1947_v7, %v755_v46  ;;  %v1406_v48 = vpop.f32.mrb[6].mxu1 }
 0x1a2   : > { %v1349_v49 = vpack.c.bf16 %v764_v45, %v764_v45  ;;  %v767_v50 = vadd.f32 %v1406_v48, %v1947_v7  ;;  %v758_v51 = vpop.f32.mrb[7].mxu1 }
 0x1a3   : > { %v1347_v52 = vpack.c.bf16 %v756_v47, %v756_v47  ;;  %v759_v53 = vadd.f32 %v1947_v7, %v758_v51 }
 0x1a4   : > { %1019 = vst.msk [vmem:[%s1953_s22 + $0x38] sm:$0xf] %vm1004_vm1, %v1349_v49  ;;  %v1350_v54 = vpack.c.bf16 %v767_v50, %v767_v50 }
 0x1a5   : > { %1017 = vst.msk [vmem:[%s1953_s22 + $0x30] sm:$0xf] %vm1004_vm1, %v1347_v52  ;;  %v1348_v55 = vpack.c.bf16 %v759_v53, %v759_v53 }
 0x1a6   : > { %1020 = vst.msk [vmem:[%s1953_s22 + $0x3c] sm:$0xf] %vm1004_vm1, %v1350_v54 }
 0x1a7   : > { %1018 = vst.msk [vmem:[%s1953_s22 + $0x34] sm:$0xf] %vm1004_vm1, %v1348_v55  ;;  %v1409_v56 = vpop.f32.mrb[8].mxu1 }
 0x1a8   : > { %v780_v57 = vadd.f32 %v1409_v56, %v1947_v7  ;;  %v771_v58 = vpop.f32.mrb[9].mxu1 }
 0x1a9   : > { %v772_v59 = vadd.f32 %v1947_v7, %v771_v58  ;;  %v1410_v60 = vpop.f32.mrb[10].mxu1 }
 0x1aa   : > { %v1353_v61 = vpack.c.bf16 %v780_v57, %v780_v57  ;;  %v783_v62 = vadd.f32 %v1410_v60, %v1947_v7  ;;  %v774_v63 = vpop.f32.mrb[11].mxu1 }
 0x1ab   : > { %v1351_v0 = vpack.c.bf16 %v772_v59, %v772_v59  ;;  %v775_v1 = vadd.f32 %v1947_v7, %v774_v63 }
 0x1ac   : > { %1023 = vst.msk [vmem:[%s1953_s22 + $0x48] sm:$0xf] %vm1004_vm1, %v1353_v61  ;;  %v1354_v2 = vpack.c.bf16 %v783_v62, %v783_v62 }
 0x1ad   : > { %1021 = vst.msk [vmem:[%s1953_s22 + $0x40] sm:$0xf] %vm1004_vm1, %v1351_v0  ;;  %v1352_v3 = vpack.c.bf16 %v775_v1, %v775_v1 }
 0x1ae   : > { %1024 = vst.msk [vmem:[%s1953_s22 + $0x4c] sm:$0xf] %vm1004_vm1, %v1354_v2 }
 0x1af   : > { %1022 = vst.msk [vmem:[%s1953_s22 + $0x44] sm:$0xf] %vm1004_vm1, %v1352_v3  ;;  %v1413_v4 = vpop.f32.mrb[12].mxu1 }
 0x1b0   : > { %v796_v5 = vadd.f32 %v1413_v4, %v1947_v7  ;;  %v787_v6 = vpop.f32.mrb[13].mxu1 }
 0x1b1   : > { %v788_v8 = vadd.f32 %v1947_v7, %v787_v6  ;;  %v1414_v9 = vpop.f32.mrb[14].mxu1 }
 0x1b2   : > { %v1357_v10 = vpack.c.bf16 %v796_v5, %v796_v5  ;;  %v799_v11 = vadd.f32 %v1414_v9, %v1947_v7  ;;  %v790_v12 = vpop.f32.mrb[15].mxu1 }
 0x1b3   : > { %v1355_v13 = vpack.c.bf16 %v788_v8, %v788_v8  ;;  %v791_v14 = vadd.f32 %v1947_v7, %v790_v12 }
 0x1b4   : > { %1027 = vst.msk [vmem:[%s1953_s22 + $0x58] sm:$0xf] %vm1004_vm1, %v1357_v10  ;;  %v1358_v15 = vpack.c.bf16 %v799_v11, %v799_v11 }
 0x1b5   : > { %1025 = vst.msk [vmem:[%s1953_s22 + $0x50] sm:$0xf] %vm1004_vm1, %v1355_v13  ;;  %v1356_v16 = vpack.c.bf16 %v791_v14, %v791_v14 }
 0x1b6   : > { %1028 = vst.msk [vmem:[%s1953_s22 + $0x5c] sm:$0xf] %vm1004_vm1, %v1358_v15 }
 0x1b7   : > { %1026 = vst.msk [vmem:[%s1953_s22 + $0x54] sm:$0xf] %vm1004_vm1, %v1356_v16  ;;  %v1417_v17 = vpop.f32.mrb[16].mxu1 }
 0x1b8   : > { %v812_v18 = vadd.f32 %v1417_v17, %v1947_v7  ;;  %v803_v19 = vpop.f32.mrb[17].mxu1 }
 0x1b9   : > { %v804_v20 = vadd.f32 %v1947_v7, %v803_v19  ;;  %v1418_v21 = vpop.f32.mrb[18].mxu1 }
 0x1ba   : > { %v1361_v22 = vpack.c.bf16 %v812_v18, %v812_v18  ;;  %v815_v23 = vadd.f32 %v1418_v21, %v1947_v7  ;;  %v806_v24 = vpop.f32.mrb[19].mxu1 }
 0x1bb   : > { %v1359_v25 = vpack.c.bf16 %v804_v20, %v804_v20  ;;  %v807_v26 = vadd.f32 %v1947_v7, %v806_v24 }
 0x1bc   : > { %1031 = vst.msk [vmem:[%s1953_s22 + $0x68] sm:$0xf] %vm1004_vm1, %v1361_v22  ;;  %v1362_v27 = vpack.c.bf16 %v815_v23, %v815_v23 }
 0x1bd   : > { %1029 = vst.msk [vmem:[%s1953_s22 + $0x60] sm:$0xf] %vm1004_vm1, %v1359_v25  ;;  %v1360_v28 = vpack.c.bf16 %v807_v26, %v807_v26 }
 0x1be   : > { %1032 = vst.msk [vmem:[%s1953_s22 + $0x6c] sm:$0xf] %vm1004_vm1, %v1362_v27 }
 0x1bf   : > { %1030 = vst.msk [vmem:[%s1953_s22 + $0x64] sm:$0xf] %vm1004_vm1, %v1360_v28  ;;  %v1421_v29 = vpop.f32.mrb[20].mxu1 }
 0x1c0   : > { %v828_v30 = vadd.f32 %v1421_v29, %v1947_v7  ;;  %v819_v31 = vpop.f32.mrb[21].mxu1 }
 0x1c1   : > { %v820_v32 = vadd.f32 %v1947_v7, %v819_v31  ;;  %v1422_v33 = vpop.f32.mrb[22].mxu1 }
 0x1c2   : > { %v1365_v34 = vpack.c.bf16 %v828_v30, %v828_v30  ;;  %v831_v35 = vadd.f32 %v1422_v33, %v1947_v7  ;;  %v822_v36 = vpop.f32.mrb[23].mxu1 }
 0x1c3   : > { %v1363_v37 = vpack.c.bf16 %v820_v32, %v820_v32  ;;  %v823_v38 = vadd.f32 %v1947_v7, %v822_v36 }
 0x1c4   : > { %1035 = vst.msk [vmem:[%s1953_s22 + $0x78] sm:$0xf] %vm1004_vm1, %v1365_v34  ;;  %v1366_v39 = vpack.c.bf16 %v831_v35, %v831_v35 }
 0x1c5   : > { %1033 = vst.msk [vmem:[%s1953_s22 + $0x70] sm:$0xf] %vm1004_vm1, %v1363_v37  ;;  %v1364_v40 = vpack.c.bf16 %v823_v38, %v823_v38 }
 0x1c6   : > { %1036 = vst.msk [vmem:[%s1953_s22 + $0x7c] sm:$0xf] %vm1004_vm1, %v1366_v39 }
 0x1c7   : > { %1034 = vst.msk [vmem:[%s1953_s22 + $0x74] sm:$0xf] %vm1004_vm1, %v1364_v40 }
 0x1c8 PF: > { %s1102_s12 = sand.u32 1, %s1629_s30   ;;  %p2104_p9 = scmp.ne.s32.totalorder %s2094_s24, 0 }
 0x1c9   : > { %p2105_p4 = scmp.ge.s32.totalorder %s1649_s14, 2  ;;  %s1103_s20 = scalar_lea.sflag [#allocation4], %s1102_s12 }
 0x1cb   : > { %p1438_p7 = pnand %p2105_p4, %p2104_p9 }
 0x1cd   : > { %1620 = dma.done.wait (!%p1438_p7), %s1103_s20, 512  }
 0x1ce   : > { %1622 = vsyncadd (!%p1438_p7), %s1103_s20, 4294966784  ;;  %s1112_s29 = scalar_lea.sflag [#allocation7], %s1102_s12 }
 0x1cf   : > { %1624 = dma.done.wait (!%p1438_p7), %s1112_s29, 64  }
 0x1d0   : > { %1626 = vsyncadd (!%p1438_p7), %s1112_s29, 4294967232  ;;  %s29_s14 = sadd.s32 1, %s1649_s14   ;;  %s2106_s27 = sld [smem:[#allocation11_spill]] }
 0x1d1   : > { %p26_p10 = scmp.ge.s32.totalorder %s29_s14, 4   ;;  %s2107_s30 = smov %s1633_s10 }
 0x1d2   : > { %s2108_s10 = smov %s1637_s11  ;;  %s2109_s11 = smov %s1765_s23 }
 0x1d3   : > { %s2110_s12 = smov %s1645_s13  ;;  %28 = sbr.rel (!%p26_p10) target bundleno = 14 (0xe), region = 122 }
 0x1d6   : > { %s2111_s13 = smov %s2106_s27 }
 0x1da   :  { %1129 = vsyncpa [#allocation3], 1 }
 0x1db   :  { %1131 = vsyncpa [#allocation3 + $0x1], 1 }
 0x1dc   :  { %1132 = vsyncpa [#allocation4], 1 }
 0x1dd   :  { %1134 = vsyncpa [#allocation4 + $0x1], 1 }
 0x1de   :  { %1135 = vsyncpa [#allocation7], 1 }
 0x1df   :  { %1137 = vsyncpa [#allocation7 + $0x1], 1 }

</bundles_post_ra>
